<compile_context>
chip_gen: v7x
topology: tpu7x:2x2x1
jax: 0.10.0
libtpu: 0.0.40
codegen_flags: <defaults>
</compile_context>

<pallas_src>
import functools

import jax
import jax.numpy as jnp
from jax import lax
from jax.experimental import pallas as pl
from jax.experimental.pallas import tpu as pltpu


def _gelu_exact(x):
    # PyTorch nn.GELU() default = exact erf formulation (kept exact; the tanh
    # approximation would go to the EUP but changes numerics).
    return 0.5 * x * (1.0 + lax.erf(x / jnp.sqrt(2.0).astype(x.dtype)))


# ---------------------------------------------------------------------------
# Pass 1: serial recurrence.  Only an (Bp,H)@(H,H) matmul + GELU per timestep.
# ---------------------------------------------------------------------------
def rnn_recurrence_kernel(xw_ref, h0_ref, wh_ref, hs_ref, h_carry, *, tb):
    # xw_ref : (tb, Bp, H) f32   time-major, already x@Wx + br
    # h0_ref : (Bp, H)     f32
    # wh_ref : (H, H)      bf16
    # hs_ref : (Bp, tb, H) bf16  batch-major output block
    # h_carry: (Bp, H)     f32   VMEM scratch, persists across grid steps
    @pl.when(pl.program_id(0) == 0)
    def _():
        h_carry[...] = h0_ref[...]

    h = h_carry[...]              # (Bp, H) f32
    wh = wh_ref[...]              # (H, H)  bf16

    # tb is small & static: a static Python loop keeps every ref index static
    # (static sublane-offset stores into the output block, which is written
    # back to HBM once per grid step as a single dense slab).
    for i in range(tb):
        pre = xw_ref[i] + jnp.dot(h.astype(jnp.bfloat16), wh,
                                  preferred_element_type=jnp.float32)
        h = _gelu_exact(pre)                          # f32 carry
        hs_ref[:, i, :] = h.astype(hs_ref.dtype)      # batch-major tile

    h_carry[...] = h


# ---------------------------------------------------------------------------
# Pass 2: fully parallel classifier over (batch row, time tile) blocks.
# ---------------------------------------------------------------------------
def classifier_kernel(hs_ref, w1_ref, w2_ref, b2_ref, out_ref):
    # hs_ref : (1, tb, H) bf16 ; w1: (H,E) bf16 ; w2: (E,V) bf16 ; b2: (1,V) f32
    h = hs_ref[0]                                                      # (tb, H)
    z = jnp.dot(h, w1_ref[...], preferred_element_type=jnp.float32)   # (tb, E)
    logits = jnp.dot(z.astype(jnp.bfloat16), w2_ref[...],
                     preferred_element_type=jnp.float32) + b2_ref[...]
    out_ref[0] = logits.astype(out_ref.dtype)


def rnn_forward_pallas(token_ids, hidden0, params, *, tb=8):
    """token_ids: (B, T) int32, hidden0: (B, H) f32 -> logits (B, T, V) f32."""
    embed_w = params["embed"]     # (V, E)
    wr = params["wr"]             # (E+H, H)
    br = params["br"]             # (1, H)
    w1 = params["w1"]             # (H, E)
    w2 = params["w2"]             # (E, V)
    b2 = params["b2"]             # (1, V)

    B, T = token_ids.shape
    V, E = embed_w.shape
    H = hidden0.shape[1]
    bf = jnp.bfloat16

    # Split Wr into Wx (x-projection) and Wh (recurrent projection):
    #   cat([x, h]) @ Wr + br == x @ Wx + h @ Wh + br
    wx = wr[:E]                   # (E, H)
    wh = wr[E:]                   # (H, H)

    # Fold x@Wx + br into the embedding table (single parallel GEMM, XLA),
    # then gather directly in time-major layout — no (B,T,E) round trip.
    proj_table = jnp.dot(embed_w.astype(bf), wx.astype(bf),
                         preferred_element_type=jnp.float32) + br        # (V, H)
    xw = jnp.take(proj_table, token_ids.T, axis=0)                       # (T, B, H) f32

    # Pad batch to a sublane multiple (8) and T to a multiple of the time tile.
    Bp = -(-B // 8) * 8
    Tp = -(-T // tb) * tb
    xw = jnp.pad(xw, ((0, Tp - T), (0, Bp - B), (0, 0)))
    h0 = jnp.pad(hidden0, ((0, Bp - B), (0, 0)))

    wh_bf = wh.astype(bf)
    w1_bf = w1.astype(bf)
    w2_bf = w2.astype(bf)

    # ---- pass 1: serial recurrence over time tiles ------------------------
    hs = pl.pallas_call(
        functools.partial(rnn_recurrence_kernel, tb=tb),
        out_shape=jax.ShapeDtypeStruct((Bp, Tp, H), bf),
        grid_spec=pltpu.PrefetchScalarGridSpec(
            num_scalar_prefetch=0,
            grid=(Tp // tb,),
            in_specs=[
                pl.BlockSpec((tb, Bp, H), lambda t: (t, 0, 0)),   # xw (time-major)
                pl.BlockSpec((Bp, H), lambda t: (0, 0)),          # h0
                pl.BlockSpec((H, H), lambda t: (0, 0)),           # Wh
            ],
            out_specs=pl.BlockSpec((Bp, tb, H), lambda t: (0, t, 0)),  # hs (batch-major)
            scratch_shapes=[pltpu.VMEM((Bp, H), jnp.float32)],
        ),
        compiler_params=pltpu.CompilerParams(
            dimension_semantics=("arbitrary",),   # sequential recurrence
        ),
    )(xw, h0, wh_bf)

    # ---- pass 2: parallel classifier --------------------------------------
    logits = pl.pallas_call(
        classifier_kernel,
        out_shape=jax.ShapeDtypeStruct((Bp, Tp, V), jnp.float32),
        grid_spec=pltpu.PrefetchScalarGridSpec(
            num_scalar_prefetch=0,
            grid=(Bp, Tp // tb),
            in_specs=[
                pl.BlockSpec((1, tb, H), lambda b, t: (b, t, 0)),  # hs
                pl.BlockSpec((H, E), lambda b, t: (0, 0)),         # W1
                pl.BlockSpec((E, V), lambda b, t: (0, 0)),         # W2
                pl.BlockSpec((1, V), lambda b, t: (0, 0)),         # b2
            ],
            out_specs=pl.BlockSpec((1, tb, V), lambda b, t: (b, t, 0)),
        ),
        compiler_params=pltpu.CompilerParams(
            dimension_semantics=("parallel", "parallel"),  # shards across TCs
        ),
    )(hs, w1_bf, w2_bf, b2)

    return logits[:B, :T]                                  # (B, T, V)


def rnn_forward_ref(token_ids, hidden0, params):
    """Pure-JAX f32 reference mirroring the PyTorch forward (exact GELU)."""
    embed_w = params["embed"]
    x = jnp.take(embed_w, token_ids, axis=0)        # (B, T, E)
    T = x.shape[1]
    h = hidden0
    outs = []
    for t in range(T):
        data = jnp.concatenate([x[:, t, :], h], axis=-1)
        pre = data @ params["wr"] + params["br"]
        h = 0.5 * pre * (1.0 + lax.erf(pre / jnp.sqrt(2.0)))
        outs.append(h)
    hs = jnp.stack(outs, axis=1)                    # (B, T, H)
    z = hs @ params["w1"]
    return z @ params["w2"] + params["b2"]


def init_params(key, vsize, embed_dim, hidden_dim):
    # RNNCell: Linear(E+H, H) + GELU; classifier = [Linear(H,E,no bias), Linear(E,V)].
    assert embed_dim == hidden_dim
    k = jax.random.split(key, 6)
    E, H, V = embed_dim, hidden_dim, vsize
    scale = 0.1
    return {
        "embed": scale * jax.random.normal(k[0], (V, E), jnp.float32),
        "wr": scale * jax.random.normal(k[1], (E + H, H), jnp.float32),
        "br": scale * jax.random.normal(k[2], (1, H), jnp.float32),
        "w1": scale * jax.random.normal(k[3], (H, E), jnp.float32),
        "w2": scale * jax.random.normal(k[4], (E, V), jnp.float32),
        "b2": scale * jax.random.normal(k[5], (1, V), jnp.float32),
    }


if __name__ == "__main__":
    V, E, H = 64, 32, 32
    B, T = 4, 8

    key = jax.random.PRNGKey(0)
    kp, kt = jax.random.split(key)
    params = init_params(kp, V, E, H)

    token_ids = jax.random.randint(kt, (B, T), 0, V, dtype=jnp.int32)
    hidden0 = jnp.zeros((B, H), jnp.float32)        # init_hidden -> zeros

    out = rnn_forward_pallas(token_ids, hidden0, params)
    out = jax.block_until_ready(out)

    ref = rnn_forward_ref(token_ids, hidden0, params)
    assert out.shape == (B, T, V), out.shape
    # bf16 matmul operands (f32 accumulation) => loosened tolerance vs f32 ref.
    assert jnp.allclose(out, ref, atol=2e-2, rtol=2e-2), (
        float(jnp.max(jnp.abs(out - ref))))

    print("KERNEL_OK")
</pallas_src>

<mosaic_0001>
module attributes {stable_mosaic.version = 11 : i64} {
  func.func @rnn_recurrence_kernel(%arg0: i32, %arg1: memref<8x8x32xf32, #tpu.memory_space<vmem>>, %arg2: memref<8x32xf32, #tpu.memory_space<vmem>>, %arg3: memref<32x32xbf16, #tpu.memory_space<vmem>>, %arg4: memref<8x8x32xbf16, #tpu.memory_space<vmem>>, %arg5: memref<8x32xf32, #tpu.memory_space<vmem>>) attributes {dimension_semantics = [#tpu.dimension_semantics<arbitrary>], iteration_bounds = array<i64: 1>, scalar_prefetch = 0 : i64, scratch_operands = 1 : i64, tpu.core_type = #tpu.core_type<tc>, window_params = [{transform_indices = @transform_0, window_bounds = array<i64: 8, 8, 32>}, {pipeline_mode = #tpu.pipeline_mode<synchronous>, transform_indices = @transform_1, window_bounds = array<i64: 8, 32>}, {pipeline_mode = #tpu.pipeline_mode<synchronous>, transform_indices = @transform_2, window_bounds = array<i64: 32, 32>}, {transform_indices = @transform_3, window_bounds = array<i64: 8, 8, 32>}]} {
    %c0_i32 = arith.constant 0 : i32
    %0 = arith.cmpi eq, %arg0, %c0_i32 : i32
    %1 = arith.extui %0 : i1 to i32
    %c0_i32_0 = arith.constant 0 : i32
    %2 = arith.cmpi ne, %1, %c0_i32_0 : i32
    scf.if %2 {
      %c0_78 = arith.constant 0 : index
      %c0_79 = arith.constant 0 : index
      %150 = vector.load %arg2[%c0_78, %c0_79] : memref<8x32xf32, #tpu.memory_space<vmem>>, vector<8x32xf32>
      %c0_80 = arith.constant 0 : index
      %c0_81 = arith.constant 0 : index
      %151 = vector.load %arg5[%c0_80, %c0_81] : memref<8x32xf32, #tpu.memory_space<vmem>>, vector<8x32xf32>
      tpu.vector_store %arg5[%c0_80, %c0_81], %150 {strides = array<i32>} : memref<8x32xf32, #tpu.memory_space<vmem>>, vector<8x32xf32>,
    } else {
    }
    %c0 = arith.constant 0 : index
    %c0_1 = arith.constant 0 : index
    %3 = vector.load %arg5[%c0, %c0_1] : memref<8x32xf32, #tpu.memory_space<vmem>>, vector<8x32xf32>
    %c0_2 = arith.constant 0 : index
    %c0_3 = arith.constant 0 : index
    %4 = vector.load %arg3[%c0_2, %c0_3] : memref<32x32xbf16, #tpu.memory_space<vmem>>, vector<32x32xbf16>
    %c0_4 = arith.constant 0 : index
    %c0_5 = arith.constant 0 : index
    %c0_6 = arith.constant 0 : index
    %5 = vector.load %arg1[%c0_4, %c0_5, %c0_6] : memref<8x8x32xf32, #tpu.memory_space<vmem>>, vector<1x8x32xf32>
    %6 = vector.shape_cast %5 : vector<1x8x32xf32> to vector<8x32xf32>
    %7 = arith.truncf %3 : vector<8x32xf32> to vector<8x32xbf16>
    %cst = arith.constant dense<0.000000e+00> : vector<8x32xf32>
    %8 = tpu.matmul %7, %4, %cst {dimension_numbers = #tpu.dot_dimension_numbers<[1], [0], [0], [1], [0, 0, 1, 1], [], []>} : vector<8x32xbf16>, vector<32x32xbf16>, vector<8x32xf32> -> vector<8x32xf32>
    %9 = arith.addf %6, %8 : vector<8x32xf32>
    %cst_7 = arith.constant 5.000000e-01 : f32
    %10 = vector.broadcast %cst_7 : f32 to vector<8x32xf32>
    %11 = arith.mulf %10, %9 : vector<8x32xf32>
    %cst_8 = arith.constant 2.000000e+00 : f32
    %12 = math.sqrt %cst_8 : f32
    %13 = vector.broadcast %12 : f32 to vector<8x32xf32>
    %14 = arith.divf %9, %13 : vector<8x32xf32>
    %15 = math.erf %14 : vector<8x32xf32>
    %cst_9 = arith.constant 1.000000e+00 : f32
    %16 = vector.broadcast %cst_9 : f32 to vector<8x32xf32>
    %17 = arith.addf %16, %15 : vector<8x32xf32>
    %18 = arith.mulf %11, %17 : vector<8x32xf32>
    %19 = arith.truncf %18 : vector<8x32xf32> to vector<8x32xbf16>
    %c0_10 = arith.constant 0 : index
    %c0_11 = arith.constant 0 : index
    %c0_12 = arith.constant 0 : index
    %20 = vector.load %arg4[%c0_10, %c0_11, %c0_12] : memref<8x8x32xbf16, #tpu.memory_space<vmem>>, vector<8x1x32xbf16>
    %21 = vector.shape_cast %20 : vector<8x1x32xbf16> to vector<8x32xbf16>
    %22 = vector.shape_cast %19 : vector<8x32xbf16> to vector<8x1x32xbf16>
    tpu.vector_store %arg4[%c0_10, %c0_11, %c0_12], %22 {strides = array<i32>} : memref<8x8x32xbf16, #tpu.memory_space<vmem>>, vector<8x1x32xbf16>,
    %c1 = arith.constant 1 : index
    %c0_13 = arith.constant 0 : index
    %c0_14 = arith.constant 0 : index
    %23 = vector.load %arg1[%c1, %c0_13, %c0_14] : memref<8x8x32xf32, #tpu.memory_space<vmem>>, vector<1x8x32xf32>
    %24 = vector.shape_cast %23 : vector<1x8x32xf32> to vector<8x32xf32>
    %25 = arith.truncf %18 : vector<8x32xf32> to vector<8x32xbf16>
    %cst_15 = arith.constant dense<0.000000e+00> : vector<8x32xf32>
    %26 = tpu.matmul %25, %4, %cst_15 {dimension_numbers = #tpu.dot_dimension_numbers<[1], [0], [0], [1], [0, 0, 1, 1], [], []>} : vector<8x32xbf16>, vector<32x32xbf16>, vector<8x32xf32> -> vector<8x32xf32>
    %27 = arith.addf %24, %26 : vector<8x32xf32>
    %cst_16 = arith.constant 5.000000e-01 : f32
    %28 = vector.broadcast %cst_16 : f32 to vector<8x32xf32>
    %29 = arith.mulf %28, %27 : vector<8x32xf32>
    %cst_17 = arith.constant 2.000000e+00 : f32
    %30 = math.sqrt %cst_17 : f32
    %31 = vector.broadcast %30 : f32 to vector<8x32xf32>
    %32 = arith.divf %27, %31 : vector<8x32xf32>
    %33 = math.erf %32 : vector<8x32xf32>
    %cst_18 = arith.constant 1.000000e+00 : f32
    %34 = vector.broadcast %cst_18 : f32 to vector<8x32xf32>
    %35 = arith.addf %34, %33 : vector<8x32xf32>
    %36 = arith.mulf %29, %35 : vector<8x32xf32>
    %37 = arith.truncf %36 : vector<8x32xf32> to vector<8x32xbf16>
    %c0_19 = arith.constant 0 : index
    %c1_20 = arith.constant 1 : index
    %c0_21 = arith.constant 0 : index
    %38 = vector.load %arg4[%c0_19, %c1_20, %c0_21] : memref<8x8x32xbf16, #tpu.memory_space<vmem>>, vector<8x1x32xbf16>
    %39 = vector.shape_cast %38 : vector<8x1x32xbf16> to vector<8x32xbf16>
    %40 = vector.shape_cast %37 : vector<8x32xbf16> to vector<8x1x32xbf16>
    tpu.vector_store %arg4[%c0_19, %c1_20, %c0_21], %40 {strides = array<i32>} : memref<8x8x32xbf16, #tpu.memory_space<vmem>>, vector<8x1x32xbf16>,
    %c2 = arith.constant 2 : index
    %c0_22 = arith.constant 0 : index
    %c0_23 = arith.constant 0 : index
    %41 = vector.load %arg1[%c2, %c0_22, %c0_23] : memref<8x8x32xf32, #tpu.memory_space<vmem>>, vector<1x8x32xf32>
    %42 = vector.shape_cast %41 : vector<1x8x32xf32> to vector<8x32xf32>
    %43 = arith.truncf %36 : vector<8x32xf32> to vector<8x32xbf16>
    %cst_24 = arith.constant dense<0.000000e+00> : vector<8x32xf32>
    %44 = tpu.matmul %43, %4, %cst_24 {dimension_numbers = #tpu.dot_dimension_numbers<[1], [0], [0], [1], [0, 0, 1, 1], [], []>} : vector<8x32xbf16>, vector<32x32xbf16>, vector<8x32xf32> -> vector<8x32xf32>
    %45 = arith.addf %42, %44 : vector<8x32xf32>
    %cst_25 = arith.constant 5.000000e-01 : f32
    %46 = vector.broadcast %cst_25 : f32 to vector<8x32xf32>
    %47 = arith.mulf %46, %45 : vector<8x32xf32>
    %cst_26 = arith.constant 2.000000e+00 : f32
    %48 = math.sqrt %cst_26 : f32
    %49 = vector.broadcast %48 : f32 to vector<8x32xf32>
    %50 = arith.divf %45, %49 : vector<8x32xf32>
    %51 = math.erf %50 : vector<8x32xf32>
    %cst_27 = arith.constant 1.000000e+00 : f32
    %52 = vector.broadcast %cst_27 : f32 to vector<8x32xf32>
    %53 = arith.addf %52, %51 : vector<8x32xf32>
    %54 = arith.mulf %47, %53 : vector<8x32xf32>
    %55 = arith.truncf %54 : vector<8x32xf32> to vector<8x32xbf16>
    %c0_28 = arith.constant 0 : index
    %c2_29 = arith.constant 2 : index
    %c0_30 = arith.constant 0 : index
    %56 = vector.load %arg4[%c0_28, %c2_29, %c0_30] : memref<8x8x32xbf16, #tpu.memory_space<vmem>>, vector<8x1x32xbf16>
    %57 = vector.shape_cast %56 : vector<8x1x32xbf16> to vector<8x32xbf16>
    %58 = vector.shape_cast %55 : vector<8x32xbf16> to vector<8x1x32xbf16>
    tpu.vector_store %arg4[%c0_28, %c2_29, %c0_30], %58 {strides = array<i32>} : memref<8x8x32xbf16, #tpu.memory_space<vmem>>, vector<8x1x32xbf16>,
    %c3 = arith.constant 3 : index
    %c0_31 = arith.constant 0 : index
    %c0_32 = arith.constant 0 : index
    %59 = vector.load %arg1[%c3, %c0_31, %c0_32] : memref<8x8x32xf32, #tpu.memory_space<vmem>>, vector<1x8x32xf32>
    %60 = vector.shape_cast %59 : vector<1x8x32xf32> to vector<8x32xf32>
    %61 = arith.truncf %54 : vector<8x32xf32> to vector<8x32xbf16>
    %cst_33 = arith.constant dense<0.000000e+00> : vector<8x32xf32>
    %62 = tpu.matmul %61, %4, %cst_33 {dimension_numbers = #tpu.dot_dimension_numbers<[1], [0], [0], [1], [0, 0, 1, 1], [], []>} : vector<8x32xbf16>, vector<32x32xbf16>, vector<8x32xf32> -> vector<8x32xf32>
    %63 = arith.addf %60, %62 : vector<8x32xf32>
    %cst_34 = arith.constant 5.000000e-01 : f32
    %64 = vector.broadcast %cst_34 : f32 to vector<8x32xf32>
    %65 = arith.mulf %64, %63 : vector<8x32xf32>
    %cst_35 = arith.constant 2.000000e+00 : f32
    %66 = math.sqrt %cst_35 : f32
    %67 = vector.broadcast %66 : f32 to vector<8x32xf32>
    %68 = arith.divf %63, %67 : vector<8x32xf32>
    %69 = math.erf %68 : vector<8x32xf32>
    %cst_36 = arith.constant 1.000000e+00 : f32
    %70 = vector.broadcast %cst_36 : f32 to vector<8x32xf32>
    %71 = arith.addf %70, %69 : vector<8x32xf32>
    %72 = arith.mulf %65, %71 : vector<8x32xf32>
    %73 = arith.truncf %72 : vector<8x32xf32> to vector<8x32xbf16>
    %c0_37 = arith.constant 0 : index
    %c3_38 = arith.constant 3 : index
    %c0_39 = arith.constant 0 : index
    %74 = vector.load %arg4[%c0_37, %c3_38, %c0_39] : memref<8x8x32xbf16, #tpu.memory_space<vmem>>, vector<8x1x32xbf16>
    %75 = vector.shape_cast %74 : vector<8x1x32xbf16> to vector<8x32xbf16>
    %76 = vector.shape_cast %73 : vector<8x32xbf16> to vector<8x1x32xbf16>
    tpu.vector_store %arg4[%c0_37, %c3_38, %c0_39], %76 {strides = array<i32>} : memref<8x8x32xbf16, #tpu.memory_space<vmem>>, vector<8x1x32xbf16>,
    %c4 = arith.constant 4 : index
    %c0_40 = arith.constant 0 : index
    %c0_41 = arith.constant 0 : index
    %77 = vector.load %arg1[%c4, %c0_40, %c0_41] : memref<8x8x32xf32, #tpu.memory_space<vmem>>, vector<1x8x32xf32>
    %78 = vector.shape_cast %77 : vector<1x8x32xf32> to vector<8x32xf32>
    %79 = arith.truncf %72 : vector<8x32xf32> to vector<8x32xbf16>
    %cst_42 = arith.constant dense<0.000000e+00> : vector<8x32xf32>
    %80 = tpu.matmul %79, %4, %cst_42 {dimension_numbers = #tpu.dot_dimension_numbers<[1], [0], [0], [1], [0, 0, 1, 1], [], []>} : vector<8x32xbf16>, vector<32x32xbf16>, vector<8x32xf32> -> vector<8x32xf32>
    %81 = arith.addf %78, %80 : vector<8x32xf32>
    %cst_43 = arith.constant 5.000000e-01 : f32
    %82 = vector.broadcast %cst_43 : f32 to vector<8x32xf32>
    %83 = arith.mulf %82, %81 : vector<8x32xf32>
    %cst_44 = arith.constant 2.000000e+00 : f32
    %84 = math.sqrt %cst_44 : f32
    %85 = vector.broadcast %84 : f32 to vector<8x32xf32>
    %86 = arith.divf %81, %85 : vector<8x32xf32>
    %87 = math.erf %86 : vector<8x32xf32>
    %cst_45 = arith.constant 1.000000e+00 : f32
    %88 = vector.broadcast %cst_45 : f32 to vector<8x32xf32>
    %89 = arith.addf %88, %87 : vector<8x32xf32>
    %90 = arith.mulf %83, %89 : vector<8x32xf32>
    %91 = arith.truncf %90 : vector<8x32xf32> to vector<8x32xbf16>
    %c0_46 = arith.constant 0 : index
    %c4_47 = arith.constant 4 : index
    %c0_48 = arith.constant 0 : index
    %92 = vector.load %arg4[%c0_46, %c4_47, %c0_48] : memref<8x8x32xbf16, #tpu.memory_space<vmem>>, vector<8x1x32xbf16>
    %93 = vector.shape_cast %92 : vector<8x1x32xbf16> to vector<8x32xbf16>
    %94 = vector.shape_cast %91 : vector<8x32xbf16> to vector<8x1x32xbf16>
    tpu.vector_store %arg4[%c0_46, %c4_47, %c0_48], %94 {strides = array<i32>} : memref<8x8x32xbf16, #tpu.memory_space<vmem>>, vector<8x1x32xbf16>,
    %c5 = arith.constant 5 : index
    %c0_49 = arith.constant 0 : index
    %c0_50 = arith.constant 0 : index
    %95 = vector.load %arg1[%c5, %c0_49, %c0_50] : memref<8x8x32xf32, #tpu.memory_space<vmem>>, vector<1x8x32xf32>
    %96 = vector.shape_cast %95 : vector<1x8x32xf32> to vector<8x32xf32>
    %97 = arith.truncf %90 : vector<8x32xf32> to vector<8x32xbf16>
    %cst_51 = arith.constant dense<0.000000e+00> : vector<8x32xf32>
    %98 = tpu.matmul %97, %4, %cst_51 {dimension_numbers = #tpu.dot_dimension_numbers<[1], [0], [0], [1], [0, 0, 1, 1], [], []>} : vector<8x32xbf16>, vector<32x32xbf16>, vector<8x32xf32> -> vector<8x32xf32>
    %99 = arith.addf %96, %98 : vector<8x32xf32>
    %cst_52 = arith.constant 5.000000e-01 : f32
    %100 = vector.broadcast %cst_52 : f32 to vector<8x32xf32>
    %101 = arith.mulf %100, %99 : vector<8x32xf32>
    %cst_53 = arith.constant 2.000000e+00 : f32
    %102 = math.sqrt %cst_53 : f32
    %103 = vector.broadcast %102 : f32 to vector<8x32xf32>
    %104 = arith.divf %99, %103 : vector<8x32xf32>
    %105 = math.erf %104 : vector<8x32xf32>
    %cst_54 = arith.constant 1.000000e+00 : f32
    %106 = vector.broadcast %cst_54 : f32 to vector<8x32xf32>
    %107 = arith.addf %106, %105 : vector<8x32xf32>
    %108 = arith.mulf %101, %107 : vector<8x32xf32>
    %109 = arith.truncf %108 : vector<8x32xf32> to vector<8x32xbf16>
    %c0_55 = arith.constant 0 : index
    %c5_56 = arith.constant 5 : index
    %c0_57 = arith.constant 0 : index
    %110 = vector.load %arg4[%c0_55, %c5_56, %c0_57] : memref<8x8x32xbf16, #tpu.memory_space<vmem>>, vector<8x1x32xbf16>
    %111 = vector.shape_cast %110 : vector<8x1x32xbf16> to vector<8x32xbf16>
    %112 = vector.shape_cast %109 : vector<8x32xbf16> to vector<8x1x32xbf16>
    tpu.vector_store %arg4[%c0_55, %c5_56, %c0_57], %112 {strides = array<i32>} : memref<8x8x32xbf16, #tpu.memory_space<vmem>>, vector<8x1x32xbf16>,
    %c6 = arith.constant 6 : index
    %c0_58 = arith.constant 0 : index
    %c0_59 = arith.constant 0 : index
    %113 = vector.load %arg1[%c6, %c0_58, %c0_59] : memref<8x8x32xf32, #tpu.memory_space<vmem>>, vector<1x8x32xf32>
    %114 = vector.shape_cast %113 : vector<1x8x32xf32> to vector<8x32xf32>
    %115 = arith.truncf %108 : vector<8x32xf32> to vector<8x32xbf16>
    %cst_60 = arith.constant dense<0.000000e+00> : vector<8x32xf32>
    %116 = tpu.matmul %115, %4, %cst_60 {dimension_numbers = #tpu.dot_dimension_numbers<[1], [0], [0], [1], [0, 0, 1, 1], [], []>} : vector<8x32xbf16>, vector<32x32xbf16>, vector<8x32xf32> -> vector<8x32xf32>
    %117 = arith.addf %114, %116 : vector<8x32xf32>
    %cst_61 = arith.constant 5.000000e-01 : f32
    %118 = vector.broadcast %cst_61 : f32 to vector<8x32xf32>
    %119 = arith.mulf %118, %117 : vector<8x32xf32>
    %cst_62 = arith.constant 2.000000e+00 : f32
    %120 = math.sqrt %cst_62 : f32
    %121 = vector.broadcast %120 : f32 to vector<8x32xf32>
    %122 = arith.divf %117, %121 : vector<8x32xf32>
    %123 = math.erf %122 : vector<8x32xf32>
    %cst_63 = arith.constant 1.000000e+00 : f32
    %124 = vector.broadcast %cst_63 : f32 to vector<8x32xf32>
    %125 = arith.addf %124, %123 : vector<8x32xf32>
    %126 = arith.mulf %119, %125 : vector<8x32xf32>
    %127 = arith.truncf %126 : vector<8x32xf32> to vector<8x32xbf16>
    %c0_64 = arith.constant 0 : index
    %c6_65 = arith.constant 6 : index
    %c0_66 = arith.constant 0 : index
    %128 = vector.load %arg4[%c0_64, %c6_65, %c0_66] : memref<8x8x32xbf16, #tpu.memory_space<vmem>>, vector<8x1x32xbf16>
    %129 = vector.shape_cast %128 : vector<8x1x32xbf16> to vector<8x32xbf16>
    %130 = vector.shape_cast %127 : vector<8x32xbf16> to vector<8x1x32xbf16>
    tpu.vector_store %arg4[%c0_64, %c6_65, %c0_66], %130 {strides = array<i32>} : memref<8x8x32xbf16, #tpu.memory_space<vmem>>, vector<8x1x32xbf16>,
    %c7 = arith.constant 7 : index
    %c0_67 = arith.constant 0 : index
    %c0_68 = arith.constant 0 : index
    %131 = vector.load %arg1[%c7, %c0_67, %c0_68] : memref<8x8x32xf32, #tpu.memory_space<vmem>>, vector<1x8x32xf32>
    %132 = vector.shape_cast %131 : vector<1x8x32xf32> to vector<8x32xf32>
    %133 = arith.truncf %126 : vector<8x32xf32> to vector<8x32xbf16>
    %cst_69 = arith.constant dense<0.000000e+00> : vector<8x32xf32>
    %134 = tpu.matmul %133, %4, %cst_69 {dimension_numbers = #tpu.dot_dimension_numbers<[1], [0], [0], [1], [0, 0, 1, 1], [], []>} : vector<8x32xbf16>, vector<32x32xbf16>, vector<8x32xf32> -> vector<8x32xf32>
    %135 = arith.addf %132, %134 : vector<8x32xf32>
    %cst_70 = arith.constant 5.000000e-01 : f32
    %136 = vector.broadcast %cst_70 : f32 to vector<8x32xf32>
    %137 = arith.mulf %136, %135 : vector<8x32xf32>
    %cst_71 = arith.constant 2.000000e+00 : f32
    %138 = math.sqrt %cst_71 : f32
    %139 = vector.broadcast %138 : f32 to vector<8x32xf32>
    %140 = arith.divf %135, %139 : vector<8x32xf32>
    %141 = math.erf %140 : vector<8x32xf32>
    %cst_72 = arith.constant 1.000000e+00 : f32
    %142 = vector.broadcast %cst_72 : f32 to vector<8x32xf32>
    %143 = arith.addf %142, %141 : vector<8x32xf32>
    %144 = arith.mulf %137, %143 : vector<8x32xf32>
    %145 = arith.truncf %144 : vector<8x32xf32> to vector<8x32xbf16>
    %c0_73 = arith.constant 0 : index
    %c7_74 = arith.constant 7 : index
    %c0_75 = arith.constant 0 : index
    %146 = vector.load %arg4[%c0_73, %c7_74, %c0_75] : memref<8x8x32xbf16, #tpu.memory_space<vmem>>, vector<8x1x32xbf16>
    %147 = vector.shape_cast %146 : vector<8x1x32xbf16> to vector<8x32xbf16>
    %148 = vector.shape_cast %145 : vector<8x32xbf16> to vector<8x1x32xbf16>
    tpu.vector_store %arg4[%c0_73, %c7_74, %c0_75], %148 {strides = array<i32>} : memref<8x8x32xbf16, #tpu.memory_space<vmem>>, vector<8x1x32xbf16>,
    %c0_76 = arith.constant 0 : index
    %c0_77 = arith.constant 0 : index
    %149 = vector.load %arg5[%c0_76, %c0_77] : memref<8x32xf32, #tpu.memory_space<vmem>>, vector<8x32xf32>
    tpu.vector_store %arg5[%c0_76, %c0_77], %144 {strides = array<i32>} : memref<8x32xf32, #tpu.memory_space<vmem>>, vector<8x32xf32>,
    return
  }
  func.func @transform_0(%arg0: i32) -> (i32, i32, i32) {
    %c0_i32 = arith.constant 0 : i32
    %c0_i32_0 = arith.constant 0 : i32
    %c0_i32_1 = arith.constant 0 : i32
    return %arg0, %c0_i32, %c0_i32_0 : i32, i32, i32
  }
  func.func @transform_1(%arg0: i32) -> (i32, i32) {
    %c0_i32 = arith.constant 0 : i32
    %c0_i32_0 = arith.constant 0 : i32
    %c0_i32_1 = arith.constant 0 : i32
    return %c0_i32, %c0_i32_0 : i32, i32
  }
  func.func @transform_2(%arg0: i32) -> (i32, i32) {
    %c0_i32 = arith.constant 0 : i32
    %c0_i32_0 = arith.constant 0 : i32
    %c0_i32_1 = arith.constant 0 : i32
    return %c0_i32, %c0_i32_0 : i32, i32
  }
  func.func @transform_3(%arg0: i32) -> (i32, i32, i32) {
    %c0_i32 = arith.constant 0 : i32
    %c0_i32_0 = arith.constant 0 : i32
    %c0_i32_1 = arith.constant 0 : i32
    return %c0_i32, %arg0, %c0_i32_0 : i32, i32, i32
  }
}

</mosaic_0001>

<bundles_post_ra>
// kernel: tpu_custom_call.1
= control target key start
LH: loop header
LB: loop body
LE: loop exit
PB: predicated region body
PF: predicated region fallthrough
CT: control target
= control target key end

     0   :  { %8 = vsyncpa [#allocation4], 0  ;;  %s2237_s0 = inlined_call_operand.hbm [shape: f32[8,8,32], index: 0, kind: input, shape index: {}]   ;;  %s2238_s1 = inlined_call_operand.hbm [shape: f32[8,32], index: 1, kind: input, shape index: {}]   ;;  %s2239_s2 = inlined_call_operand.hbm [shape: bf16[32,32], index: 2, kind: input, shape index: {}]   ;;  %s2240_s3 = inlined_call_operand.hbm [shape: bf16[8,8,32], index: 3, kind: output, shape index: {}]  }
   0x1   :  { %9 = vsyncpa [#allocation7], 0 }
   0x2   :  { %10 = vsyncpa [#allocation5], 0  ;;  %s1822_s12 = smov [#allocation6]   ;;  %s1823_s14 = smov [#allocation3]  }
   0x3   :  { %s29_s13 = sshll.u32 %s1822_s12, 4  ;;  %s16_s15 = sshll.u32 %s1823_s14, 4  ;;  %s30_s13 = int_to_ptr.vmem [resolvable:$true] %s29_s13  ;;  %s1854_s15 = int_to_ptr.vmem [resolvable:$true] %s16_s15 }
   0x4   :  { %s1728_s18 = scalar_lea.hbm %s2238_s1, 128 }
   0x5   :  { %p1729_p0 = scmp.ne.s32.totalorder %s2238_s1, %s1728_s18  ;;  %p1732_p1 = scmp.lt.u32.totalorder %s1728_s18, %s2238_s1 }
   0x7   :  { %p1734_p2 = pnand %p1732_p1, %p1729_p0 }
   0x9   :  { %1737 = shalt.err (!%p1734_p2)
}
   0xa   :  { %s1738_s23 = scalar_lea.vmem %s30_s13, 128  ;;  %p1743_p4 = scmp.lt.s32.totalorder %s30_s13, %s30_s13 }
   0xb   :  { %p1739_p3 = scmp.ne.s32.totalorder %s30_s13, %s1738_s23  ;;  %p1744_p5 = scmp.lt.s32.totalorder %s1738_s23, %s1738_s23 }
   0xd   :  { %p1745_p6 = por %p1744_p5, %p1743_p4 }
   0xf   :  { %p1746_p7 = pnand %p1745_p6, %p1739_p3 }
  0x11   :  { %1749 = shalt.err (!%p1746_p7)
}
  0x12   :  { %32 = dma.hbm_to_vmem [thread:$0]  %s2238_s1, 128, %s30_s13, [#allocation7]  }
  0x13   :  { %s1750_s28 = scalar_lea.hbm %s2237_s0, 1024 }
  0x14   :  { %p1751_p8 = scmp.ne.s32.totalorder %s2237_s0, %s1750_s28  ;;  %p1754_p9 = scmp.lt.u32.totalorder %s1750_s28, %s2237_s0 }
  0x16   :  { %p1756_p10 = pnand %p1754_p9, %p1751_p8 }
  0x18   :  { %1759 = shalt.err (!%p1756_p10)
}
  0x19   :  { %s1760_s6 = scalar_lea.vmem %s1854_s15, 1024  ;;  %p1765_p12 = scmp.lt.s32.totalorder %s1854_s15, %s1854_s15 }
  0x1a   :  { %p1761_p11 = scmp.ne.s32.totalorder %s1854_s15, %s1760_s6  ;;  %p1766_p13 = scmp.lt.s32.totalorder %s1760_s6, %s1760_s6 }
  0x1c   :  { %p1767_p0 = por %p1766_p13, %p1765_p12 }
  0x1e   :  { %p1768_p1 = pnand %p1767_p0, %p1761_p11 }
  0x20   :  { %1771 = shalt.err (!%p1768_p1)
}
  0x21   :  { %s1824_s1 = smov 128   ;;  %s1825_s7 = smov 8  }
  0x22   :  { %22 = dma.hbm_to_vmem [thread:$0]  %s2237_s0, 1024, %s1854_s15, [#allocation4], %s1824_s1, %s1824_s1, %s1825_s7  }
  0x23   :  { %s1826_s10 = smov [#allocation8]   ;;  %s1772_s14 = scalar_lea.hbm %s2239_s2, 256 }
  0x24   :  { %s38_s11 = sshll.u32 %s1826_s10, 4  ;;  %p1773_p2 = scmp.ne.s32.totalorder %s2239_s2, %s1772_s14  ;;  %s39_s11 = int_to_ptr.vmem [resolvable:$true] %s38_s11 }
  0x25   :  { %p1776_p3 = scmp.lt.u32.totalorder %s1772_s14, %s2239_s2 }
  0x27   :  { %p1778_p4 = pnand %p1776_p3, %p1773_p2 }
  0x29   :  { %1781 = shalt.err (!%p1778_p4)
}
  0x2a   :  { %s1782_s20 = scalar_lea.vmem %s39_s11, 256  ;;  %p1787_p6 = scmp.lt.s32.totalorder %s39_s11, %s39_s11 }
  0x2b   :  { %p1783_p5 = scmp.ne.s32.totalorder %s39_s11, %s1782_s20  ;;  %p1788_p7 = scmp.lt.s32.totalorder %s1782_s20, %s1782_s20 }
  0x2d   :  { %p1789_p8 = por %p1788_p7, %p1787_p6 }
  0x2f   :  { %p1790_p9 = pnand %p1789_p8, %p1783_p5 }
  0x31   :  { %1793 = shalt.err (!%p1790_p9)
}
  0x32   :  { %s1827_s0 = smov 64   ;;  %s1828_s15 = smov 4  }
  0x33   :  { %44 = dma.hbm_to_vmem [thread:$0]  %s2239_s2, 256, %s39_s11, [#allocation7], %s1827_s0, %s1827_s0, %s1828_s15  }
  0x34   :  { %1816 = dma.done.wait [#allocation4], 1024  }
  0x35   :  { %1817 = vsyncadd [#allocation4], 4294966272 }
  0x36   :  { %1818 = dma.done.wait [#allocation7], 384  }
  0x37   :  { %1819 = vsyncadd [#allocation7], 4294966912  ;;  %v1829_v0 = vmov 0.0   ;;  %vm1830_vm0 = vmmov 0   ;;  %v1906_v1 = vld [vmem:[#allocation8] sm:$0xff]   ;;  %vm60_vm1 = vcmask 261120   ;;  %v137_v15 = vlaneseq }
  0x38   :  { %1634 = vmatprep.subr.bf16.mxu0 %v1829_v0  ;;  %1638 = vmatprep.mubr.msk.bf16.mxu0 %vm1830_vm0, %v1829_v0  ;;  %v1909_v2 = vld [vmem:[#allocation8 + $0x8] sm:$0xff]   ;;  %v59_v3 = vld [vmem:[#allocation6] sm:$0xff]  ;;  %v1831_v13 = vmov 1966171168   ;;  %v1832_v21 = vmov 286326784   ;;  %vm238_vm2 = vcmask 253952  }
  0x39   :  { %1642 = vmatprep.subr.bf16.mxu1 %v1829_v0  ;;  %1646 = vmatprep.mubr.msk.bf16.mxu1 %vm1830_vm0, %v1829_v0  ;;  %61 = vst.msk [vmem:[#allocation2] sm:$0xff] %vm60_vm1, %v59_v3  ;;  %v67_v6 = vld [vmem:[#allocation3] sm:$0xff]  ;;  %v135_v14 = vunpack.c.l.s4 %v1831_v13  ;;  %v138_v17 = vshrl.u32 %v137_v15, 7  ;;  %v175_v22 = vunpack.c.l.s4 %v1832_v21  ;;  %vm239_vm3 = vsmask.f32 256  ;;  %s1833_s2 = smov [#allocation9]  }
  0x3a   :  { %1635 = vmatpush3.bf16.msra.mxu0 %v1906_v1  ;;  %1643 = vmatpush3.bf16.msra.mxu1 %v1906_v1  ;;  %vm1940_vm4 = vmand %vm238_vm2, %vm239_vm3  ;;  %v241_v40 = vld [vmem:[#allocation9] sm:$0x1]  ;;  %v244_v48 = vld [vmem:[#allocation9 + $0x4] sm:$0x1]  ;;  %vm422_vm5 = vsmask.f32 7938 }
  0x3b   :  { %1636 = vmatprep.subr.bf16.mxu0 %v1829_v0  ;;  %1644 = vmatprep.subr.bf16.mxu1 %v1829_v0  ;;  %v136_v16 = vunpack.c.0.s8 %v135_v14  ;;  %v176_v26 = vunpack.c.0.s8 %v175_v22  ;;  %v247_v49 = vld [vmem:[#allocation9 + $0x8] sm:$0x1]  ;;  %v253_v50 = vld [vmem:[#allocation9 + $0x10] sm:$0x1]  ;;  %v250_v55 = vld [vmem:[#allocation9 + $0xc] sm:$0x1] }
  0x3c   :  { %v256_v56 = vld [vmem:[#allocation9 + $0x14] sm:$0x1]  ;;  %v259_v57 = vld [vmem:[#allocation9 + $0x18] sm:$0x1]  ;;  %vm1979_vm6 = vmand %vm238_vm2, %vm422_vm5  ;;  %vm605_vm7 = vcmask 254977   ;;  %vm972_vm12 = vcmask 256002  }
  0x3d   :  { %v1926_v24 = vsub.s32 %v136_v16, %v138_v17  ;;  %v1935_v30 = vsub.s32 %v176_v26, %v138_v17  ;;  %vm606_vm8 = vsmask.f32 1280  ;;  %vm789_vm10 = vsmask.f32 7942  ;;  %s1555_s23 = sshll.u32 %s1833_s2, 4  ;;  %s1556_s23 = int_to_ptr.vmem [resolvable:$true] %s1555_s23 }
  0x3e   :  { %1637 = vmatpush3.bf16.msra.mxu0 %v1909_v2  ;;  %1645 = vmatpush3.bf16.msra.mxu1 %v1909_v2  ;;  %vm2018_vm9 = vmand %vm605_vm7, %vm606_vm8  ;;  %vm973_vm13 = vsmask.f32 2304  ;;  %vm1156_vm15 = vsmask.f32 7946  ;;  %vm1339_vm2 = vcmask 257027   ;;  %s1794_s24 = scalar_lea.vmem %s1556_s23, 512  ;;  %p1799_p11 = scmp.lt.s32.totalorder %s1556_s23, %s1556_s23 }
  0x3f   :  { %1650 = vmatprep.subr.bf16.mxu0 %v1829_v0  ;;  %1658 = vmatprep.subr.bf16.mxu1 %v1829_v0  ;;  %vm2057_vm11 = vmand %vm605_vm7, %vm789_vm10  ;;  %vm1340_vm3 = vsmask.f32 3328  ;;  %vm1523_vm5 = vsmask.f32 7950  ;;  %p1795_p10 = scmp.ne.s32.totalorder %s1556_s23, %s1794_s24  ;;  %p1800_p12 = scmp.lt.s32.totalorder %s1794_s24, %s1794_s24 }
  0x40   :  { %v62_v4 = vld [vmem:[#allocation2] sm:$0xff]  ;;  %vm2095_vm14 = vmand %vm972_vm12, %vm973_vm13 }
  0x41   :  { %v68_v5 = vpack.c.bf16 %v62_v4, %v62_v4  ;;  %v262_v4 = vld [vmem:[#allocation9 + $0x1c] sm:$0x1]  ;;  %p1801_p13 = por %p1800_p12, %p1799_p11 }
  0x43   :  { %1639 = vmatmul.mubr.msk.bf16.vlgmr.msra.gmra.mrb[0].mxu0 %vm60_vm1, %v68_v5  ;;  %p1802_p0 = pnand %p1801_p13, %p1795_p10 }
  0x44   :  { %1651 = vmatpush3.bf16.msra.mxu0 %v1906_v1  ;;  %1654 = vmatprep.mubr.msk.bf16.mxu0 %vm1830_vm0, %v1829_v0 }
  0x45   :  { %1652 = vmatprep.subr.bf16.mxu0 %v1829_v0 }
  0x48   :  { %1653 = vmatpush3.bf16.msra.mxu0 %v1909_v2 }
  0x49   :  { %1666 = vmatprep.subr.bf16.mxu0 %v1829_v0 }
 0x116   :  { %v119_v7 = vpop.f32.mrb[0].mxu0 }
 0x117   :  { %v125_v8 = vadd.f32 %v119_v7, %v67_v6  ;;  %v1640_v9 = vpop.f32.mrb[1].mxu0 }
 0x118   :  { %v122_v10 = vpop.f32.mrb[2].mxu0 }
 0x119   :  { %v128_v11 = vmul.f32 0.70710677, %v125_v8  ;;  %v1641_v12 = vpop.f32.mrb[3].mxu0  ;;  %v126_v19 = vmul.f32 0.5, %v125_v8  ;;  %v266_v10 = vld [vmem:[#allocation3 + $0x8] sm:$0xff] }
 0x11b   :  { %1712 = verf.f32 %v128_v11 }
 0x125   :  { %v1713_v18 = vpop.eup %1712 }
 0x126   :  { %v130_v20 = vadd.f32 1.0, %v1713_v18 }
 0x128   :  { %v131_v23 = vmul.f32 %v130_v20, %v126_v19 }
 0x12a   :  { %v132_v25 = vpack.c.bf16 %v131_v23, %v131_v23 }
 0x12c   :  { %v140_v27 = vrot.slane %v132_v25, %v1926_v24  ;;  %1647 = vmatmul.mubr.msk.bf16.vlgmr.msra.gmra.mrb[0].mxu1 %vm60_vm1, %v132_v25 }
 0x12d   :  { %1659 = vmatpush3.bf16.msra.mxu1 %v1906_v1  ;;  %1662 = vmatprep.mubr.msk.bf16.mxu1 %vm1830_vm0, %v1829_v0 }
 0x12e   :  { %v141_v28 = vcombine.high %v140_v27, %v140_v27  ;;  %v148_v29 = vrot.slane %v140_v27, %v1926_v24  ;;  %1660 = vmatprep.subr.bf16.mxu1 %v1829_v0 }
 0x130   :  { %v155_v31 = vrot.slane %v141_v28, %v1926_v24  ;;  %v156_v32 = vcombine.high %v148_v29, %v148_v29  ;;  %v159_v33 = vunpack.i.h.s16 %v148_v29  ;;  %v1571_v34 = vpack.i.b16 %v148_v29, %v148_v29 }
 0x131   :  { %1661 = vmatpush3.bf16.msra.mxu1 %v1909_v2 }
 0x132   :  { %v157_v35 = vcombine.high %v155_v31, %v155_v31  ;;  %v161_v36 = vunpack.i.h.s16 %v155_v31  ;;  %v163_v37 = vunpack.i.h.s16 %v156_v32  ;;  %v167_v38 = vpack.i.b16 %v159_v33, %v159_v33  ;;  %1674 = vmatprep.subr.bf16.mxu1 %v1829_v0 }
 0x133   :  { %v1572_v41 = vpack.i.b16 %v155_v31, %v155_v31  ;;  %v1573_v42 = vpack.i.b16 %v156_v32, %v156_v32  ;;  %v180_v43 = vrot.slane %v1571_v34, %v1935_v30 }
 0x134   :  { %v165_v44 = vunpack.i.h.s16 %v157_v35  ;;  %v169_v45 = vpack.i.b16 %v161_v36, %v161_v36  ;;  %v171_v46 = vpack.i.b16 %v163_v37, %v163_v37  ;;  %v1574_v47 = vpack.i.b16 %v157_v35, %v157_v35 }
 0x135   :  { %v187_v51 = vrot.slane %v167_v38, %v1935_v30  ;;  %v194_v52 = vrot.slane %v1572_v41, %v1935_v30  ;;  %v208_v53 = vrot.slane %v1573_v42, %v1935_v30  ;;  %v242_v54 = vsel %vm1940_vm4, %v180_v43, %v241_v40 }
 0x136   :  { %v173_v58 = vpack.i.b16 %v165_v44, %v165_v44  ;;  %v201_v59 = vrot.slane %v169_v45, %v1935_v30  ;;  %v215_v60 = vrot.slane %v171_v46, %v1935_v30  ;;  %v222_v61 = vrot.slane %v1574_v47, %v1935_v30  ;;  %243 = vst [vmem:[#allocation9] sm:$0x1] %v242_v54 }
 0x137   :  { %v245_v62 = vsel %vm1940_vm4, %v187_v51, %v244_v48  ;;  %v248_v63 = vsel %vm1940_vm4, %v194_v52, %v247_v49  ;;  %v254_v3 = vsel %vm1940_vm4, %v208_v53, %v253_v50 }
 0x138   :  { %v229_v5 = vrot.slane %v173_v58, %v1935_v30  ;;  %246 = vst [vmem:[#allocation9 + $0x4] sm:$0x1] %v245_v62  ;;  %249 = vst [vmem:[#allocation9 + $0x8] sm:$0x1] %v248_v63  ;;  %v251_v6 = vsel %vm1940_vm4, %v201_v59, %v250_v55  ;;  %v257_v7 = vsel %vm1940_vm4, %v215_v60, %v256_v56 }
 0x139   :  { %255 = vst [vmem:[#allocation9 + $0x10] sm:$0x1] %v254_v3  ;;  %v260_v8 = vsel %vm1940_vm4, %v222_v61, %v259_v57  ;;  %252 = vst [vmem:[#allocation9 + $0xc] sm:$0x1] %v251_v6  ;;  %v449_v6 = vld [vmem:[#allocation3 + $0x10] sm:$0xff] }
 0x13a   :  { %258 = vst [vmem:[#allocation9 + $0x14] sm:$0x1] %v257_v7  ;;  %261 = vst [vmem:[#allocation9 + $0x18] sm:$0x1] %v260_v8  ;;  %v263_v9 = vsel %vm1940_vm4, %v229_v5, %v262_v4 }
 0x13b   :  { %264 = vst [vmem:[#allocation9 + $0x1c] sm:$0x1] %v263_v9  ;;  %vm2161_vm4 = vmand %vm1339_vm2, %vm1340_vm3 }
 0x13d   :  { %v424_v43 = vld [vmem:[#allocation9] sm:$0x1] }
 0x13f   :  { %v427_v52 = vld [vmem:[#allocation9 + $0x4] sm:$0x1]  ;;  %v430_v53 = vld [vmem:[#allocation9 + $0x8] sm:$0x1] }
 0x140   :  { %v436_v54 = vld [vmem:[#allocation9 + $0x10] sm:$0x1]  ;;  %v433_v57 = vld [vmem:[#allocation9 + $0xc] sm:$0x1] }
 0x141   :  { %v439_v59 = vld [vmem:[#allocation9 + $0x14] sm:$0x1]  ;;  %v442_v60 = vld [vmem:[#allocation9 + $0x18] sm:$0x1] }
 0x142   :  { %v445_v4 = vld [vmem:[#allocation9 + $0x1c] sm:$0x1] }
 0x1ff   :  { %v304_v11 = vpop.f32.mrb[0].mxu1 }
 0x200   :  { %v310_v12 = vadd.f32 %v304_v11, %v266_v10  ;;  %v1648_v13 = vpop.f32.mrb[1].mxu1 }
 0x201   :  { %v307_v14 = vpop.f32.mrb[2].mxu1 }
 0x202   :  { %v312_v15 = vmul.f32 0.70710677, %v310_v12  ;;  %v1649_v16 = vpop.f32.mrb[3].mxu1  ;;  %v311_v18 = vmul.f32 0.5, %v310_v12 }
 0x204   :  { %1714 = verf.f32 %v312_v15 }
 0x20e   :  { %v1715_v17 = vpop.eup %1714 }
 0x20f   :  { %v314_v19 = vadd.f32 1.0, %v1715_v17 }
 0x211   :  { %v315_v20 = vmul.f32 %v314_v19, %v311_v18 }
 0x213   :  { %v316_v21 = vpack.c.bf16 %v315_v20, %v315_v20 }
 0x215   :  { %v324_v22 = vrot.slane %v316_v21, %v1926_v24  ;;  %1655 = vmatmul.mubr.msk.bf16.vlgmr.msra.gmra.mrb[4].mxu0 %vm60_vm1, %v316_v21 }
 0x216   :  { %1667 = vmatpush3.bf16.msra.mxu0 %v1906_v1  ;;  %1670 = vmatprep.mubr.msk.bf16.mxu0 %vm1830_vm0, %v1829_v0 }
 0x217   :  { %v325_v23 = vcombine.high %v324_v22, %v324_v22  ;;  %v332_v25 = vrot.slane %v324_v22, %v1926_v24  ;;  %1668 = vmatprep.subr.bf16.mxu0 %v1829_v0 }
 0x219   :  { %v339_v26 = vrot.slane %v325_v23, %v1926_v24  ;;  %v340_v27 = vcombine.high %v332_v25, %v332_v25  ;;  %v343_v28 = vunpack.i.h.s16 %v332_v25  ;;  %v1576_v29 = vpack.i.b16 %v332_v25, %v332_v25 }
 0x21a   :  { %1669 = vmatpush3.bf16.msra.mxu0 %v1909_v2 }
 0x21b   :  { %v341_v31 = vcombine.high %v339_v26, %v339_v26  ;;  %v345_v32 = vunpack.i.h.s16 %v339_v26  ;;  %v347_v33 = vunpack.i.h.s16 %v340_v27  ;;  %v351_v34 = vpack.i.b16 %v343_v28, %v343_v28  ;;  %1682 = vmatprep.subr.bf16.mxu0 %v1829_v0 }
 0x21c   :  { %v1577_v36 = vpack.i.b16 %v339_v26, %v339_v26  ;;  %v1578_v37 = vpack.i.b16 %v340_v27, %v340_v27  ;;  %v364_v38 = vrot.slane %v1576_v29, %v1935_v30 }
 0x21d   :  { %v349_v39 = vunpack.i.h.s16 %v341_v31  ;;  %v353_v40 = vpack.i.b16 %v345_v32, %v345_v32  ;;  %v355_v41 = vpack.i.b16 %v347_v33, %v347_v33  ;;  %v1579_v42 = vpack.i.b16 %v341_v31, %v341_v31  ;;  %v608_v32 = vld [vmem:[#allocation9] sm:$0x2] }
 0x21e   :  { %v371_v44 = vrot.slane %v351_v34, %v1935_v30  ;;  %v378_v45 = vrot.slane %v1577_v36, %v1935_v30  ;;  %v392_v46 = vrot.slane %v1578_v37, %v1935_v30  ;;  %v425_v47 = vsel %vm1979_vm6, %v364_v38, %v424_v43 }
 0x21f   :  { %v357_v48 = vpack.i.b16 %v349_v39, %v349_v39  ;;  %v385_v49 = vrot.slane %v353_v40, %v1935_v30  ;;  %v399_v50 = vrot.slane %v355_v41, %v1935_v30  ;;  %v406_v51 = vrot.slane %v1579_v42, %v1935_v30  ;;  %426 = vst [vmem:[#allocation9] sm:$0x1] %v425_v47  ;;  %v611_v40 = vld [vmem:[#allocation9 + $0x4] sm:$0x2]  ;;  %v614_v41 = vld [vmem:[#allocation9 + $0x8] sm:$0x2] }
 0x220   :  { %v428_v55 = vsel %vm1979_vm6, %v371_v44, %v427_v52  ;;  %v431_v56 = vsel %vm1979_vm6, %v378_v45, %v430_v53  ;;  %v437_v58 = vsel %vm1979_vm6, %v392_v46, %v436_v54  ;;  %v620_v42 = vld [vmem:[#allocation9 + $0x10] sm:$0x2]  ;;  %v617_v47 = vld [vmem:[#allocation9 + $0xc] sm:$0x2] }
 0x221   :  { %v413_v61 = vrot.slane %v357_v48, %v1935_v30  ;;  %429 = vst [vmem:[#allocation9 + $0x4] sm:$0x1] %v428_v55  ;;  %432 = vst [vmem:[#allocation9 + $0x8] sm:$0x1] %v431_v56  ;;  %v434_v62 = vsel %vm1979_vm6, %v385_v49, %v433_v57  ;;  %v440_v63 = vsel %vm1979_vm6, %v399_v50, %v439_v59  ;;  %v623_v48 = vld [vmem:[#allocation9 + $0x14] sm:$0x2] }
 0x222   :  { %438 = vst [vmem:[#allocation9 + $0x10] sm:$0x1] %v437_v58  ;;  %v443_v3 = vsel %vm1979_vm6, %v406_v51, %v442_v60  ;;  %435 = vst [vmem:[#allocation9 + $0xc] sm:$0x1] %v434_v62  ;;  %v626_v49 = vld [vmem:[#allocation9 + $0x18] sm:$0x2] }
 0x223   :  { %441 = vst [vmem:[#allocation9 + $0x14] sm:$0x1] %v440_v63  ;;  %444 = vst [vmem:[#allocation9 + $0x18] sm:$0x1] %v443_v3  ;;  %v446_v5 = vsel %vm1979_vm6, %v413_v61, %v445_v4  ;;  %v629_v57 = vld [vmem:[#allocation9 + $0x1c] sm:$0x2] }
 0x224   :  { %447 = vst [vmem:[#allocation9 + $0x1c] sm:$0x1] %v446_v5  ;;  %v633_v63 = vld [vmem:[#allocation3 + $0x18] sm:$0xff]  ;;  %vm2194_vm6 = vmand %vm1339_vm2, %vm1523_vm5 }
 0x2e8   :  { %v487_v7 = vpop.f32.mrb[4].mxu0 }
 0x2e9   :  { %v493_v8 = vadd.f32 %v487_v7, %v449_v6  ;;  %v1656_v9 = vpop.f32.mrb[5].mxu0 }
 0x2ea   :  { %v490_v10 = vpop.f32.mrb[6].mxu0 }
 0x2eb   :  { %v495_v11 = vmul.f32 0.70710677, %v493_v8  ;;  %v1657_v12 = vpop.f32.mrb[7].mxu0  ;;  %v494_v14 = vmul.f32 0.5, %v493_v8 }
 0x2ed   :  { %1716 = verf.f32 %v495_v11 }
 0x2f7   :  { %v1717_v13 = vpop.eup %1716 }
 0x2f8   :  { %v497_v15 = vadd.f32 1.0, %v1717_v13 }
 0x2fa   :  { %v498_v16 = vmul.f32 %v497_v15, %v494_v14 }
 0x2fc   :  { %v499_v17 = vpack.c.bf16 %v498_v16, %v498_v16 }
 0x2fe   :  { %v507_v18 = vrot.slane %v499_v17, %v1926_v24  ;;  %1663 = vmatmul.mubr.msk.bf16.vlgmr.msra.gmra.mrb[4].mxu1 %vm60_vm1, %v499_v17 }
 0x2ff   :  { %1675 = vmatpush3.bf16.msra.mxu1 %v1906_v1  ;;  %1678 = vmatprep.mubr.msk.bf16.mxu1 %vm1830_vm0, %v1829_v0 }
 0x300   :  { %v508_v19 = vcombine.high %v507_v18, %v507_v18  ;;  %v515_v20 = vrot.slane %v507_v18, %v1926_v24  ;;  %1676 = vmatprep.subr.bf16.mxu1 %v1829_v0 }
 0x302   :  { %v522_v21 = vrot.slane %v508_v19, %v1926_v24  ;;  %v523_v22 = vcombine.high %v515_v20, %v515_v20  ;;  %v526_v23 = vunpack.i.h.s16 %v515_v20  ;;  %v1581_v25 = vpack.i.b16 %v515_v20, %v515_v20 }
 0x303   :  { %1677 = vmatpush3.bf16.msra.mxu1 %v1909_v2 }
 0x304   :  { %v524_v26 = vcombine.high %v522_v21, %v522_v21  ;;  %v528_v27 = vunpack.i.h.s16 %v522_v21  ;;  %v530_v28 = vunpack.i.h.s16 %v523_v22  ;;  %v534_v29 = vpack.i.b16 %v526_v23, %v526_v23  ;;  %1690 = vmatprep.subr.bf16.mxu1 %v1829_v0 }
 0x305   :  { %v1582_v33 = vpack.i.b16 %v522_v21, %v522_v21  ;;  %v1583_v34 = vpack.i.b16 %v523_v22, %v523_v22  ;;  %v547_v35 = vrot.slane %v1581_v25, %v1935_v30 }
 0x306   :  { %v532_v36 = vunpack.i.h.s16 %v524_v26  ;;  %v536_v37 = vpack.i.b16 %v528_v27, %v528_v27  ;;  %v538_v38 = vpack.i.b16 %v530_v28, %v530_v28  ;;  %v1584_v39 = vpack.i.b16 %v524_v26, %v524_v26 }
 0x307   :  { %v554_v43 = vrot.slane %v534_v29, %v1935_v30  ;;  %v561_v44 = vrot.slane %v1582_v33, %v1935_v30  ;;  %v575_v45 = vrot.slane %v1583_v34, %v1935_v30  ;;  %v609_v46 = vsel %vm2018_vm9, %v547_v35, %v608_v32 }
 0x308   :  { %v540_v50 = vpack.i.b16 %v532_v36, %v532_v36  ;;  %v568_v51 = vrot.slane %v536_v37, %v1935_v30  ;;  %v582_v52 = vrot.slane %v538_v38, %v1935_v30  ;;  %v589_v53 = vrot.slane %v1584_v39, %v1935_v30  ;;  %610 = vst [vmem:[#allocation9] sm:$0x2] %v609_v46 }
 0x309   :  { %v612_v54 = vsel %vm2018_vm9, %v554_v43, %v611_v40  ;;  %v615_v55 = vsel %vm2018_vm9, %v561_v44, %v614_v41  ;;  %v621_v56 = vsel %vm2018_vm9, %v575_v45, %v620_v42 }
 0x30a   :  { %v596_v58 = vrot.slane %v540_v50, %v1935_v30  ;;  %613 = vst [vmem:[#allocation9 + $0x4] sm:$0x2] %v612_v54  ;;  %616 = vst [vmem:[#allocation9 + $0x8] sm:$0x2] %v615_v55  ;;  %v618_v59 = vsel %vm2018_vm9, %v568_v51, %v617_v47  ;;  %v624_v60 = vsel %vm2018_vm9, %v582_v52, %v623_v48 }
 0x30b   :  { %622 = vst [vmem:[#allocation9 + $0x10] sm:$0x2] %v621_v56  ;;  %v627_v61 = vsel %vm2018_vm9, %v589_v53, %v626_v49  ;;  %619 = vst [vmem:[#allocation9 + $0xc] sm:$0x2] %v618_v59  ;;  %v816_v59 = vld [vmem:[#allocation3 + $0x20] sm:$0xff] }
 0x30c   :  { %625 = vst [vmem:[#allocation9 + $0x14] sm:$0x2] %v624_v60  ;;  %628 = vst [vmem:[#allocation9 + $0x18] sm:$0x2] %v627_v61  ;;  %v630_v62 = vsel %vm2018_vm9, %v596_v58, %v629_v57 }
 0x30d   :  { %631 = vst [vmem:[#allocation9 + $0x1c] sm:$0x2] %v630_v62 }
 0x30f   :  { %v791_v35 = vld [vmem:[#allocation9] sm:$0x2] }
 0x311   :  { %v794_v44 = vld [vmem:[#allocation9 + $0x4] sm:$0x2]  ;;  %v797_v45 = vld [vmem:[#allocation9 + $0x8] sm:$0x2] }
 0x312   :  { %v803_v46 = vld [vmem:[#allocation9 + $0x10] sm:$0x2]  ;;  %v800_v49 = vld [vmem:[#allocation9 + $0xc] sm:$0x2] }
 0x313   :  { %v806_v51 = vld [vmem:[#allocation9 + $0x14] sm:$0x2]  ;;  %v809_v52 = vld [vmem:[#allocation9 + $0x18] sm:$0x2] }
 0x314   :  { %v812_v57 = vld [vmem:[#allocation9 + $0x1c] sm:$0x2] }
 0x3d1   :  { %v671_v3 = vpop.f32.mrb[4].mxu1 }
 0x3d2   :  { %v677_v4 = vadd.f32 %v671_v3, %v633_v63  ;;  %v1664_v5 = vpop.f32.mrb[5].mxu1 }
 0x3d3   :  { %v674_v6 = vpop.f32.mrb[6].mxu1 }
 0x3d4   :  { %v679_v7 = vmul.f32 0.70710677, %v677_v4  ;;  %v1665_v8 = vpop.f32.mrb[7].mxu1  ;;  %v678_v10 = vmul.f32 0.5, %v677_v4 }
 0x3d6   :  { %1718 = verf.f32 %v679_v7 }
 0x3e0   :  { %v1719_v9 = vpop.eup %1718 }
 0x3e1   :  { %v681_v11 = vadd.f32 1.0, %v1719_v9 }
 0x3e3   :  { %v682_v12 = vmul.f32 %v681_v11, %v678_v10 }
 0x3e5   :  { %v683_v13 = vpack.c.bf16 %v682_v12, %v682_v12 }
 0x3e7   :  { %v691_v14 = vrot.slane %v683_v13, %v1926_v24  ;;  %1671 = vmatmul.mubr.msk.bf16.vlgmr.msra.gmra.mrb[8].mxu0 %vm60_vm1, %v683_v13 }
 0x3e8   :  { %1683 = vmatpush3.bf16.msra.mxu0 %v1906_v1  ;;  %1686 = vmatprep.mubr.msk.bf16.mxu0 %vm1830_vm0, %v1829_v0 }
 0x3e9   :  { %v692_v15 = vcombine.high %v691_v14, %v691_v14  ;;  %v699_v16 = vrot.slane %v691_v14, %v1926_v24  ;;  %1684 = vmatprep.subr.bf16.mxu0 %v1829_v0 }
 0x3eb   :  { %v706_v17 = vrot.slane %v692_v15, %v1926_v24  ;;  %v707_v18 = vcombine.high %v699_v16, %v699_v16  ;;  %v710_v19 = vunpack.i.h.s16 %v699_v16  ;;  %v1586_v20 = vpack.i.b16 %v699_v16, %v699_v16 }
 0x3ec   :  { %1685 = vmatpush3.bf16.msra.mxu0 %v1909_v2 }
 0x3ed   :  { %v708_v21 = vcombine.high %v706_v17, %v706_v17  ;;  %v712_v22 = vunpack.i.h.s16 %v706_v17  ;;  %v714_v23 = vunpack.i.h.s16 %v707_v18  ;;  %v718_v25 = vpack.i.b16 %v710_v19, %v710_v19 }
 0x3ee   :  { %v1587_v27 = vpack.i.b16 %v706_v17, %v706_v17  ;;  %v1588_v28 = vpack.i.b16 %v707_v18, %v707_v18  ;;  %v731_v29 = vrot.slane %v1586_v20, %v1935_v30 }
 0x3ef   :  { %v716_v31 = vunpack.i.h.s16 %v708_v21  ;;  %v720_v32 = vpack.i.b16 %v712_v22, %v712_v22  ;;  %v722_v33 = vpack.i.b16 %v714_v23, %v714_v23  ;;  %v1589_v34 = vpack.i.b16 %v708_v21, %v708_v21  ;;  %v975_v21 = vld [vmem:[#allocation9] sm:$0x4] }
 0x3f0   :  { %v738_v36 = vrot.slane %v718_v25, %v1935_v30  ;;  %v745_v37 = vrot.slane %v1587_v27, %v1935_v30  ;;  %v759_v38 = vrot.slane %v1588_v28, %v1935_v30  ;;  %v792_v39 = vsel %vm2057_vm11, %v731_v29, %v791_v35  ;;  %v978_v29 = vld [vmem:[#allocation9 + $0x4] sm:$0x4] }
 0x3f1   :  { %v724_v40 = vpack.i.b16 %v716_v31, %v716_v31  ;;  %v752_v41 = vrot.slane %v720_v32, %v1935_v30  ;;  %v766_v42 = vrot.slane %v722_v33, %v1935_v30  ;;  %v773_v43 = vrot.slane %v1589_v34, %v1935_v30  ;;  %793 = vst [vmem:[#allocation9] sm:$0x2] %v792_v39  ;;  %v987_v31 = vld [vmem:[#allocation9 + $0x10] sm:$0x4] }
 0x3f2   :  { %v795_v47 = vsel %vm2057_vm11, %v738_v36, %v794_v44  ;;  %v798_v48 = vsel %vm2057_vm11, %v745_v37, %v797_v45  ;;  %v804_v50 = vsel %vm2057_vm11, %v759_v38, %v803_v46  ;;  %v984_v36 = vld [vmem:[#allocation9 + $0xc] sm:$0x4]  ;;  %v990_v37 = vld [vmem:[#allocation9 + $0x14] sm:$0x4]  ;;  %v993_v38 = vld [vmem:[#allocation9 + $0x18] sm:$0x4] }
 0x3f3   :  { %v780_v53 = vrot.slane %v724_v40, %v1935_v30  ;;  %796 = vst [vmem:[#allocation9 + $0x4] sm:$0x2] %v795_v47  ;;  %799 = vst [vmem:[#allocation9 + $0x8] sm:$0x2] %v798_v48  ;;  %v801_v54 = vsel %vm2057_vm11, %v752_v41, %v800_v49  ;;  %v807_v55 = vsel %vm2057_vm11, %v766_v42, %v806_v51  ;;  %v996_v46 = vld [vmem:[#allocation9 + $0x1c] sm:$0x4] }
 0x3f4   :  { %805 = vst [vmem:[#allocation9 + $0x10] sm:$0x2] %v804_v50  ;;  %v810_v56 = vsel %vm2057_vm11, %v773_v43, %v809_v52  ;;  %802 = vst [vmem:[#allocation9 + $0xc] sm:$0x2] %v801_v54  ;;  %v1000_v52 = vld [vmem:[#allocation3 + $0x28] sm:$0xff] }
 0x3f5   :  { %808 = vst [vmem:[#allocation9 + $0x14] sm:$0x2] %v807_v55  ;;  %811 = vst [vmem:[#allocation9 + $0x18] sm:$0x2] %v810_v56  ;;  %v813_v58 = vsel %vm2057_vm11, %v780_v53, %v812_v57 }
 0x3f6   :  { %814 = vst [vmem:[#allocation9 + $0x1c] sm:$0x2] %v813_v58 }
 0x4ba   :  { %v854_v60 = vpop.f32.mrb[8].mxu0 }
 0x4bb   :  { %v860_v61 = vadd.f32 %v854_v60, %v816_v59  ;;  %v1672_v62 = vpop.f32.mrb[9].mxu0 }
 0x4bc   :  { %v857_v63 = vpop.f32.mrb[10].mxu0 }
 0x4bd   :  { %v862_v3 = vmul.f32 0.70710677, %v860_v61  ;;  %v1673_v4 = vpop.f32.mrb[11].mxu0  ;;  %v861_v6 = vmul.f32 0.5, %v860_v61 }
 0x4bf   :  { %1720 = verf.f32 %v862_v3 }
 0x4c9   :  { %v1721_v5 = vpop.eup %1720 }
 0x4ca   :  { %v864_v7 = vadd.f32 1.0, %v1721_v5 }
 0x4cc   :  { %v865_v8 = vmul.f32 %v864_v7, %v861_v6 }
 0x4ce   :  { %v866_v9 = vpack.c.bf16 %v865_v8, %v865_v8 }
 0x4d0   :  { %v874_v10 = vrot.slane %v866_v9, %v1926_v24  ;;  %1679 = vmatmul.mubr.msk.bf16.vlgmr.msra.gmra.mrb[8].mxu1 %vm60_vm1, %v866_v9 }
 0x4d1   :  { %1691 = vmatpush3.bf16.msra.mxu1 %v1906_v1  ;;  %1694 = vmatprep.mubr.msk.bf16.mxu1 %vm1830_vm0, %v1829_v0  ;;  %vm2128_vm0 = vmand %vm972_vm12, %vm1156_vm15 }
 0x4d2   :  { %v875_v11 = vcombine.high %v874_v10, %v874_v10  ;;  %v882_v12 = vrot.slane %v874_v10, %v1926_v24  ;;  %1692 = vmatprep.subr.bf16.mxu1 %v1829_v0 }
 0x4d4   :  { %v889_v13 = vrot.slane %v875_v11, %v1926_v24  ;;  %v890_v14 = vcombine.high %v882_v12, %v882_v12  ;;  %v893_v15 = vunpack.i.h.s16 %v882_v12  ;;  %v1591_v16 = vpack.i.b16 %v882_v12, %v882_v12 }
 0x4d5   :  { %1693 = vmatpush3.bf16.msra.mxu1 %v1909_v2  ;;  %v981_v2 = vld [vmem:[#allocation9 + $0x8] sm:$0x4] }
 0x4d6   :  { %v891_v17 = vcombine.high %v889_v13, %v889_v13  ;;  %v895_v18 = vunpack.i.h.s16 %v889_v13  ;;  %v897_v1 = vunpack.i.h.s16 %v890_v14  ;;  %v901_v19 = vpack.i.b16 %v893_v15, %v893_v15 }
 0x4d7   :  { %v1592_v0 = vpack.i.b16 %v889_v13, %v889_v13  ;;  %v1593_v22 = vpack.i.b16 %v890_v14, %v890_v14  ;;  %v914_v23 = vrot.slane %v1591_v16, %v1935_v30 }
 0x4d8   :  { %v899_v25 = vunpack.i.h.s16 %v891_v17  ;;  %v903_v26 = vpack.i.b16 %v895_v18, %v895_v18  ;;  %v905_v27 = vpack.i.b16 %v897_v1, %v897_v1  ;;  %v1594_v28 = vpack.i.b16 %v891_v17, %v891_v17 }
 0x4d9   :  { %v921_v32 = vrot.slane %v901_v19, %v1935_v30  ;;  %v928_v33 = vrot.slane %v1592_v0, %v1935_v30  ;;  %v942_v34 = vrot.slane %v1593_v22, %v1935_v30  ;;  %v976_v35 = vsel %vm2095_vm14, %v914_v23, %v975_v21 }
 0x4da   :  { %v907_v39 = vpack.i.b16 %v899_v25, %v899_v25  ;;  %v935_v40 = vrot.slane %v903_v26, %v1935_v30  ;;  %v949_v41 = vrot.slane %v905_v27, %v1935_v30  ;;  %v956_v42 = vrot.slane %v1594_v28, %v1935_v30  ;;  %977 = vst [vmem:[#allocation9] sm:$0x4] %v976_v35 }
 0x4db   :  { %v979_v43 = vsel %vm2095_vm14, %v921_v32, %v978_v29  ;;  %v982_v44 = vsel %vm2095_vm14, %v928_v33, %v981_v2  ;;  %v988_v45 = vsel %vm2095_vm14, %v942_v34, %v987_v31 }
 0x4dc   :  { %v963_v47 = vrot.slane %v907_v39, %v1935_v30  ;;  %980 = vst [vmem:[#allocation9 + $0x4] sm:$0x4] %v979_v43  ;;  %983 = vst [vmem:[#allocation9 + $0x8] sm:$0x4] %v982_v44  ;;  %v985_v48 = vsel %vm2095_vm14, %v935_v40, %v984_v36  ;;  %v991_v49 = vsel %vm2095_vm14, %v949_v41, %v990_v37 }
 0x4dd   :  { %989 = vst [vmem:[#allocation9 + $0x10] sm:$0x4] %v988_v45  ;;  %v994_v50 = vsel %vm2095_vm14, %v956_v42, %v993_v38  ;;  %986 = vst [vmem:[#allocation9 + $0xc] sm:$0x4] %v985_v48  ;;  %v1183_v45 = vld [vmem:[#allocation3 + $0x30] sm:$0xff] }
 0x4de   :  { %992 = vst [vmem:[#allocation9 + $0x14] sm:$0x4] %v991_v49  ;;  %995 = vst [vmem:[#allocation9 + $0x18] sm:$0x4] %v994_v50  ;;  %v997_v51 = vsel %vm2095_vm14, %v963_v47, %v996_v46 }
 0x4df   :  { %998 = vst [vmem:[#allocation9 + $0x1c] sm:$0x4] %v997_v51 }
 0x4e1   :  { %v1158_v21 = vld [vmem:[#allocation9] sm:$0x4] }
 0x4e3   :  { %v1161_v2 = vld [vmem:[#allocation9 + $0x4] sm:$0x4]  ;;  %v1164_v31 = vld [vmem:[#allocation9 + $0x8] sm:$0x4] }
 0x4e4   :  { %v1170_v32 = vld [vmem:[#allocation9 + $0x10] sm:$0x4]  ;;  %v1167_v35 = vld [vmem:[#allocation9 + $0xc] sm:$0x4] }
 0x4e5   :  { %v1173_v37 = vld [vmem:[#allocation9 + $0x14] sm:$0x4]  ;;  %v1176_v38 = vld [vmem:[#allocation9 + $0x18] sm:$0x4] }
 0x4e6   :  { %v1179_v43 = vld [vmem:[#allocation9 + $0x1c] sm:$0x4] }
 0x5a3   :  { %v1038_v53 = vpop.f32.mrb[8].mxu1 }
 0x5a4   :  { %v1044_v54 = vadd.f32 %v1038_v53, %v1000_v52  ;;  %v1680_v55 = vpop.f32.mrb[9].mxu1 }
 0x5a5   :  { %v1041_v56 = vpop.f32.mrb[10].mxu1 }
 0x5a6   :  { %v1046_v57 = vmul.f32 0.70710677, %v1044_v54  ;;  %v1681_v58 = vpop.f32.mrb[11].mxu1  ;;  %v1045_v60 = vmul.f32 0.5, %v1044_v54 }
 0x5a8   :  { %1722 = verf.f32 %v1046_v57 }
 0x5b2   :  { %v1723_v59 = vpop.eup %1722 }
 0x5b3   :  { %v1048_v61 = vadd.f32 1.0, %v1723_v59 }
 0x5b5   :  { %v1049_v62 = vmul.f32 %v1048_v61, %v1045_v60 }
 0x5b7   :  { %v1050_v63 = vpack.c.bf16 %v1049_v62, %v1049_v62 }
 0x5b9   :  { %v1058_v3 = vrot.slane %v1050_v63, %v1926_v24  ;;  %1687 = vmatmul.mubr.msk.bf16.vlgmr.msra.gmra.mrb[12].mxu0 %vm60_vm1, %v1050_v63 }
 0x5bb   :  { %v1059_v4 = vcombine.high %v1058_v3, %v1058_v3  ;;  %v1066_v5 = vrot.slane %v1058_v3, %v1926_v24 }
 0x5bd   :  { %v1073_v6 = vrot.slane %v1059_v4, %v1926_v24  ;;  %v1074_v7 = vcombine.high %v1066_v5, %v1066_v5  ;;  %v1077_v8 = vunpack.i.h.s16 %v1066_v5  ;;  %v1596_v9 = vpack.i.b16 %v1066_v5, %v1066_v5 }
 0x5bf   :  { %v1075_v10 = vcombine.high %v1073_v6, %v1073_v6  ;;  %v1079_v11 = vunpack.i.h.s16 %v1073_v6  ;;  %v1081_v12 = vunpack.i.h.s16 %v1074_v7  ;;  %v1085_v13 = vpack.i.b16 %v1077_v8, %v1077_v8  ;;  %v1342_v8 = vld [vmem:[#allocation9] sm:$0x8] }
 0x5c0   :  { %v1597_v15 = vpack.i.b16 %v1073_v6, %v1073_v6  ;;  %v1598_v16 = vpack.i.b16 %v1074_v7, %v1074_v7  ;;  %v1098_v17 = vrot.slane %v1596_v9, %v1935_v30 }
 0x5c1   :  { %v1083_v18 = vunpack.i.h.s16 %v1075_v10  ;;  %v1087_v1 = vpack.i.b16 %v1079_v11, %v1079_v11  ;;  %v1089_v19 = vpack.i.b16 %v1081_v12, %v1081_v12  ;;  %v1599_v20 = vpack.i.b16 %v1075_v10, %v1075_v10 }
 0x5c2   :  { %v1105_v0 = vrot.slane %v1085_v13, %v1935_v30  ;;  %v1112_v22 = vrot.slane %v1597_v15, %v1935_v30  ;;  %v1126_v23 = vrot.slane %v1598_v16, %v1935_v30  ;;  %v1159_v25 = vsel %vm2128_vm0, %v1098_v17, %v1158_v21  ;;  %v1345_v16 = vld [vmem:[#allocation9 + $0x4] sm:$0x8]  ;;  %v1348_v17 = vld [vmem:[#allocation9 + $0x8] sm:$0x8] }
 0x5c3   :  { %v1091_v26 = vpack.i.b16 %v1083_v18, %v1083_v18  ;;  %v1119_v27 = vrot.slane %v1087_v1, %v1935_v30  ;;  %v1133_v28 = vrot.slane %v1089_v19, %v1935_v30  ;;  %v1140_v29 = vrot.slane %v1599_v20, %v1935_v30  ;;  %1160 = vst [vmem:[#allocation9] sm:$0x4] %v1159_v25  ;;  %v1354_v18 = vld [vmem:[#allocation9 + $0x10] sm:$0x8] }
 0x5c4   :  { %v1162_v33 = vsel %vm2128_vm0, %v1105_v0, %v1161_v2  ;;  %v1165_v34 = vsel %vm2128_vm0, %v1112_v22, %v1164_v31  ;;  %v1171_v36 = vsel %vm2128_vm0, %v1126_v23, %v1170_v32  ;;  %v1351_v0 = vld [vmem:[#allocation9 + $0xc] sm:$0x8]  ;;  %v1357_v22 = vld [vmem:[#allocation9 + $0x14] sm:$0x8]  ;;  %v1360_v23 = vld [vmem:[#allocation9 + $0x18] sm:$0x8] }
 0x5c5   :  { %v1147_v39 = vrot.slane %v1091_v26, %v1935_v30  ;;  %1163 = vst [vmem:[#allocation9 + $0x4] sm:$0x4] %v1162_v33  ;;  %1166 = vst [vmem:[#allocation9 + $0x8] sm:$0x4] %v1165_v34  ;;  %v1168_v40 = vsel %vm2128_vm0, %v1119_v27, %v1167_v35  ;;  %v1174_v41 = vsel %vm2128_vm0, %v1133_v28, %v1173_v37  ;;  %v1363_v32 = vld [vmem:[#allocation9 + $0x1c] sm:$0x8] }
 0x5c6   :  { %1172 = vst [vmem:[#allocation9 + $0x10] sm:$0x4] %v1171_v36  ;;  %v1177_v42 = vsel %vm2128_vm0, %v1140_v29, %v1176_v38  ;;  %1169 = vst [vmem:[#allocation9 + $0xc] sm:$0x4] %v1168_v40  ;;  %v1367_v38 = vld [vmem:[#allocation3 + $0x38] sm:$0xff] }
 0x5c7   :  { %1175 = vst [vmem:[#allocation9 + $0x14] sm:$0x4] %v1174_v41  ;;  %1178 = vst [vmem:[#allocation9 + $0x18] sm:$0x4] %v1177_v42  ;;  %v1180_v44 = vsel %vm2128_vm0, %v1147_v39, %v1179_v43 }
 0x5c8   :  { %1181 = vst [vmem:[#allocation9 + $0x1c] sm:$0x4] %v1180_v44 }
 0x68c   :  { %v1221_v46 = vpop.f32.mrb[12].mxu0 }
 0x68d   :  { %v1227_v47 = vadd.f32 %v1221_v46, %v1183_v45  ;;  %v1688_v48 = vpop.f32.mrb[13].mxu0 }
 0x68e   :  { %v1224_v49 = vpop.f32.mrb[14].mxu0 }
 0x68f   :  { %v1229_v50 = vmul.f32 0.70710677, %v1227_v47  ;;  %v1689_v51 = vpop.f32.mrb[15].mxu0  ;;  %v1228_v53 = vmul.f32 0.5, %v1227_v47 }
 0x691   :  { %1724 = verf.f32 %v1229_v50 }
 0x69b   :  { %v1725_v52 = vpop.eup %1724 }
 0x69c   :  { %v1231_v54 = vadd.f32 1.0, %v1725_v52 }
 0x69e   :  { %v1232_v55 = vmul.f32 %v1231_v54, %v1228_v53 }
 0x6a0   :  { %v1233_v56 = vpack.c.bf16 %v1232_v55, %v1232_v55 }
 0x6a2   :  { %v1241_v57 = vrot.slane %v1233_v56, %v1926_v24  ;;  %1695 = vmatmul.mubr.msk.bf16.vlgmr.msra.gmra.mrb[12].mxu1 %vm60_vm1, %v1233_v56 }
 0x6a4   :  { %v1242_v58 = vcombine.high %v1241_v57, %v1241_v57  ;;  %v1249_v59 = vrot.slane %v1241_v57, %v1926_v24 }
 0x6a6   :  { %v1256_v60 = vrot.slane %v1242_v58, %v1926_v24  ;;  %v1257_v61 = vcombine.high %v1249_v59, %v1249_v59  ;;  %v1260_v62 = vunpack.i.h.s16 %v1249_v59  ;;  %v1601_v63 = vpack.i.b16 %v1249_v59, %v1249_v59 }
 0x6a8   :  { %v1258_v3 = vcombine.high %v1256_v60, %v1256_v60  ;;  %v1262_v4 = vunpack.i.h.s16 %v1256_v60  ;;  %v1264_v5 = vunpack.i.h.s16 %v1257_v61  ;;  %v1268_v6 = vpack.i.b16 %v1260_v62, %v1260_v62 }
 0x6a9   :  { %v1602_v9 = vpack.i.b16 %v1256_v60, %v1256_v60  ;;  %v1603_v10 = vpack.i.b16 %v1257_v61, %v1257_v61  ;;  %v1281_v11 = vrot.slane %v1601_v63, %v1935_v30 }
 0x6aa   :  { %v1266_v12 = vunpack.i.h.s16 %v1258_v3  ;;  %v1270_v13 = vpack.i.b16 %v1262_v4, %v1262_v4  ;;  %v1272_v14 = vpack.i.b16 %v1264_v5, %v1264_v5  ;;  %v1604_v15 = vpack.i.b16 %v1258_v3, %v1258_v3 }
 0x6ab   :  { %v1288_v1 = vrot.slane %v1268_v6, %v1935_v30  ;;  %v1295_v19 = vrot.slane %v1602_v9, %v1935_v30  ;;  %v1309_v20 = vrot.slane %v1603_v10, %v1935_v30  ;;  %v1343_v21 = vsel %vm2161_vm4, %v1281_v11, %v1342_v8 }
 0x6ac   :  { %v1274_v25 = vpack.i.b16 %v1266_v12, %v1266_v12  ;;  %v1302_v26 = vrot.slane %v1270_v13, %v1935_v30  ;;  %v1316_v27 = vrot.slane %v1272_v14, %v1935_v30  ;;  %v1323_v28 = vrot.slane %v1604_v15, %v1935_v30  ;;  %1344 = vst [vmem:[#allocation9] sm:$0x8] %v1343_v21 }
 0x6ad   :  { %v1346_v29 = vsel %vm2161_vm4, %v1288_v1, %v1345_v16  ;;  %v1349_v2 = vsel %vm2161_vm4, %v1295_v19, %v1348_v17  ;;  %v1355_v31 = vsel %vm2161_vm4, %v1309_v20, %v1354_v18 }
 0x6ae   :  { %v1330_v33 = vrot.slane %v1274_v25, %v1935_v30  ;;  %1347 = vst [vmem:[#allocation9 + $0x4] sm:$0x8] %v1346_v29  ;;  %1350 = vst [vmem:[#allocation9 + $0x8] sm:$0x8] %v1349_v2  ;;  %v1352_v34 = vsel %vm2161_vm4, %v1302_v26, %v1351_v0  ;;  %v1358_v35 = vsel %vm2161_vm4, %v1316_v27, %v1357_v22 }
 0x6af   :  { %1356 = vst [vmem:[#allocation9 + $0x10] sm:$0x8] %v1355_v31  ;;  %v1361_v36 = vsel %vm2161_vm4, %v1323_v28, %v1360_v23  ;;  %1353 = vst [vmem:[#allocation9 + $0xc] sm:$0x8] %v1352_v34 }
 0x6b0   :  { %1359 = vst [vmem:[#allocation9 + $0x14] sm:$0x8] %v1358_v35  ;;  %1362 = vst [vmem:[#allocation9 + $0x18] sm:$0x8] %v1361_v36  ;;  %v1364_v37 = vsel %vm2161_vm4, %v1330_v33, %v1363_v32 }
 0x6b1   :  { %1365 = vst [vmem:[#allocation9 + $0x1c] sm:$0x8] %v1364_v37 }
 0x6b3   :  { %v1525_v7 = vld [vmem:[#allocation9] sm:$0x8] }
 0x6b5   :  { %v1528_v12 = vld [vmem:[#allocation9 + $0x4] sm:$0x8]  ;;  %v1531_v17 = vld [vmem:[#allocation9 + $0x8] sm:$0x8] }
 0x6b6   :  { %v1537_v18 = vld [vmem:[#allocation9 + $0x10] sm:$0x8]  ;;  %v1534_v20 = vld [vmem:[#allocation9 + $0xc] sm:$0x8] }
 0x6b7   :  { %v1540_v0 = vld [vmem:[#allocation9 + $0x14] sm:$0x8]  ;;  %v1543_v22 = vld [vmem:[#allocation9 + $0x18] sm:$0x8] }
 0x6b8   :  { %v1546_v28 = vld [vmem:[#allocation9 + $0x1c] sm:$0x8] }
 0x775   :  { %v1405_v39 = vpop.f32.mrb[12].mxu1 }
 0x776   :  { %v1411_v40 = vadd.f32 %v1405_v39, %v1367_v38  ;;  %v1696_v41 = vpop.f32.mrb[13].mxu1 }
 0x777   :  { %v1408_v42 = vpop.f32.mrb[14].mxu1 }
 0x778   :  { %v1413_v43 = vmul.f32 0.70710677, %v1411_v40  ;;  %v1697_v44 = vpop.f32.mrb[15].mxu1  ;;  %v1412_v46 = vmul.f32 0.5, %v1411_v40 }
 0x77a   :  { %1726 = verf.f32 %v1413_v43 }
 0x784   :  { %v1727_v45 = vpop.eup %1726 }
 0x785   :  { %v1415_v47 = vadd.f32 1.0, %v1727_v45 }
 0x787   :  { %v1416_v48 = vmul.f32 %v1415_v47, %v1412_v46 }
 0x789   :  { %v1417_v49 = vpack.c.bf16 %v1416_v48, %v1416_v48  ;;  %1549 = vst.msk [vmem:[#allocation2] sm:$0xff] %vm60_vm1, %v1416_v48 }
 0x78b   :  { %v1425_v50 = vrot.slane %v1417_v49, %v1926_v24 }
 0x78d   :  { %v1426_v51 = vcombine.high %v1425_v50, %v1425_v50  ;;  %v1433_v52 = vrot.slane %v1425_v50, %v1926_v24 }
 0x78f   :  { %v1440_v53 = vrot.slane %v1426_v51, %v1926_v24  ;;  %v1441_v54 = vcombine.high %v1433_v52, %v1433_v52  ;;  %v1444_v55 = vunpack.i.h.s16 %v1433_v52  ;;  %v1606_v56 = vpack.i.b16 %v1433_v52, %v1433_v52 }
 0x791   :  { %v1442_v57 = vcombine.high %v1440_v53, %v1440_v53  ;;  %v1446_v58 = vunpack.i.h.s16 %v1440_v53  ;;  %v1448_v59 = vunpack.i.h.s16 %v1441_v54  ;;  %v1452_v60 = vpack.i.b16 %v1444_v55, %v1444_v55 }
 0x792   :  { %v1607_v62 = vpack.i.b16 %v1440_v53, %v1440_v53  ;;  %v1608_v63 = vpack.i.b16 %v1441_v54, %v1441_v54  ;;  %v1465_v3 = vrot.slane %v1606_v56, %v1935_v30 }
 0x793   :  { %v1450_v4 = vunpack.i.h.s16 %v1442_v57  ;;  %v1454_v5 = vpack.i.b16 %v1446_v58, %v1446_v58  ;;  %v1456_v6 = vpack.i.b16 %v1448_v59, %v1448_v59  ;;  %v1609_v24 = vpack.i.b16 %v1442_v57, %v1442_v57 }
 0x794   :  { %v1472_v8 = vrot.slane %v1452_v60, %v1935_v30  ;;  %v1479_v9 = vrot.slane %v1607_v62, %v1935_v30  ;;  %v1493_v10 = vrot.slane %v1608_v63, %v1935_v30  ;;  %v1526_v11 = vsel %vm2194_vm6, %v1465_v3, %v1525_v7 }
 0x795   :  { %v1458_v13 = vpack.i.b16 %v1450_v4, %v1450_v4  ;;  %v1486_v14 = vrot.slane %v1454_v5, %v1935_v30  ;;  %v1500_v15 = vrot.slane %v1456_v6, %v1935_v30  ;;  %v1507_v16 = vrot.slane %v1609_v24, %v1935_v30  ;;  %1527 = vst [vmem:[#allocation9] sm:$0x8] %v1526_v11 }
 0x796   :  { %v1529_v1 = vsel %vm2194_vm6, %v1472_v8, %v1528_v12  ;;  %v1532_v19 = vsel %vm2194_vm6, %v1479_v9, %v1531_v17  ;;  %v1538_v21 = vsel %vm2194_vm6, %v1493_v10, %v1537_v18 }
 0x797   :  { %v1514_v23 = vrot.slane %v1458_v13, %v1935_v30  ;;  %1530 = vst [vmem:[#allocation9 + $0x4] sm:$0x8] %v1529_v1  ;;  %1533 = vst [vmem:[#allocation9 + $0x8] sm:$0x8] %v1532_v19  ;;  %v1535_v25 = vsel %vm2194_vm6, %v1486_v14, %v1534_v20  ;;  %v1541_v26 = vsel %vm2194_vm6, %v1500_v15, %v1540_v0 }
 0x798   :  { %1539 = vst [vmem:[#allocation9 + $0x10] sm:$0x8] %v1538_v21  ;;  %v1544_v27 = vsel %vm2194_vm6, %v1507_v16, %v1543_v22  ;;  %1536 = vst [vmem:[#allocation9 + $0xc] sm:$0x8] %v1535_v25 }
 0x799   :  { %1542 = vst [vmem:[#allocation9 + $0x14] sm:$0x8] %v1541_v26  ;;  %1545 = vst [vmem:[#allocation9 + $0x18] sm:$0x8] %v1544_v27  ;;  %v1547_v30 = vsel %vm2194_vm6, %v1514_v23, %v1546_v28 }
 0x79a   :  { %1548 = vst [vmem:[#allocation9 + $0x1c] sm:$0x8] %v1547_v30 }
 0x79b   :  { %1805 = shalt.err (!%p1802_p0)
}
 0x79c   :  { %s1806_s27 = scalar_lea.hbm %s2240_s3, 512 }
 0x79d   :  { %p1807_p1 = scmp.ne.s32.totalorder %s2240_s3, %s1806_s27  ;;  %p1810_p2 = scmp.lt.u32.totalorder %s1806_s27, %s2240_s3 }
 0x79f   :  { %p1812_p3 = pnand %p1810_p2, %p1807_p1 }
 0x7a1   :  { %1815 = shalt.err (!%p1812_p3)
}
 0x7a2   :  { %1561 = dma.vmem_to_hbm [thread:$0]  %s1556_s23, 512, %s2240_s3, [#allocation5], %s1827_s0, %s1827_s0, %s1828_s15  }
 0x7a3   :  { %1820 = dma.done.wait [#allocation5], 512  }
 0x7a4   :  { %1821 = vsyncadd [#allocation5], 4294966784 }
 0x7a5   :  { %1565 = vsyncpa [#allocation4], 1 }
 0x7a6   :  { %1566 = vsyncpa [#allocation7], 1 }
 0x7a7   :  { %1567 = vsyncpa [#allocation5], 1 }

</bundles_post_ra>
